<compile_context>
chip_gen: v5e
topology: v5e:2x2
jax: 0.10.0
libtpu: 0.0.40
codegen_flags: <defaults>
</compile_context>

<pallas_src>
import functools

import jax
import jax.numpy as jnp
from jax.experimental import pallas as pl
from jax.experimental.pallas import tpu as pltpu


def _round_up(x, m):
    return (x + m - 1) // m * m


# --------------------------------------------------------------------------------------
# Pallas kernel: default-mask (eye / 1-eye) L2L InfoNCE, both directions in one pass.
# --------------------------------------------------------------------------------------
def _cnce_l2l_kernel(h1_ref, h2_ref, o_ref,
                     row_acc, col_acc, diag_acc, logrow_acc,
                     *, tau, n_valid, n_pad, blk, mxu_dtype):
    qi = pl.program_id(0)
    ki = pl.program_id(1)
    nq = pl.num_programs(0)
    nk = pl.num_programs(1)

    masked = n_valid != n_pad            # static Python bool: padded rows/cols exist
    inv_tau = jnp.float32(1.0 / tau)

    # -- init persistent accumulators on the very first grid step ----------------------
    @pl.when(jnp.logical_and(qi == 0, ki == 0))
    def _():
        col_acc[...] = jnp.zeros_like(col_acc)
        diag_acc[...] = jnp.zeros_like(diag_acc)
        logrow_acc[...] = jnp.zeros_like(logrow_acc)

    # -- per-query-row accumulator resets at the start of each ki sweep ----------------
    @pl.when(ki == 0)
    def _():
        row_acc[...] = jnp.zeros_like(row_acc)

    # -- L2 normalize in f32 (matches F.normalize(dim=-1): x / max(||x||, eps)) --------
    eps2 = jnp.float32(1e-24)            # eps^2 clamp for rsqrt
    q = h1_ref[...].astype(jnp.float32)
    k = h2_ref[...].astype(jnp.float32)
    q = q * jax.lax.rsqrt(jnp.maximum(jnp.sum(q * q, axis=-1, keepdims=True), eps2))
    k = k * jax.lax.rsqrt(jnp.maximum(jnp.sum(k * k, axis=-1, keepdims=True), eps2))
    q = q * inv_tau                      # fold 1/tau into one matmul operand

    # -- single MXU matmul, no materialised transpose: sim[i,j] = <z1_i, z2_j> / tau ---
    sim = jax.lax.dot_general(
        q.astype(mxu_dtype), k.astype(mxu_dtype),
        dimension_numbers=(((1,), (1,)), ((), ())),
        preferred_element_type=jnp.float32)                  # [blk, blk] f32

    if masked:
        row_ids = qi * blk + jax.lax.broadcasted_iota(jnp.int32, (blk, blk), 0)
        col_ids = ki * blk + jax.lax.broadcasted_iota(jnp.int32, (blk, blk), 1)
        e = jnp.where(jnp.logical_and(row_ids < n_valid, col_ids < n_valid),
                      jnp.exp(sim), 0.0)
    else:
        e = jnp.exp(sim)

    # direction 1 denominator: row sums of exp(sim), accumulated over the key axis
    row_acc[...] += jnp.sum(e, axis=1, keepdims=True)
    # direction 2 denominator: column sums of exp(sim), accumulated over the query axis
    col_acc[ki] = col_acc[ki] + jnp.sum(e, axis=0, keepdims=True)

    # shared positive term: diagonal of sim (only diagonal tiles contribute)
    @pl.when(qi == ki)
    def _():
        di = jax.lax.broadcasted_iota(jnp.int32, (blk, blk), 0)
        dj = jax.lax.broadcasted_iota(jnp.int32, (blk, blk), 1)
        dmask = di == dj
        if masked:
            dmask = jnp.logical_and(dmask, qi * blk + di < n_valid)
        diag_acc[...] += jnp.sum(jnp.where(dmask, sim, 0.0), keepdims=True)

    # finish direction-1 log-denominator for this query tile
    @pl.when(ki == nk - 1)
    def _():
        r = row_acc[...]                                     # [blk, 1]
        if masked:
            rid = qi * blk + jax.lax.broadcasted_iota(jnp.int32, (blk, 1), 0)
            logs = jnp.where(rid < n_valid, jnp.log(r), 0.0)
        else:
            logs = jnp.log(r)
        logrow_acc[...] += jnp.sum(logs, keepdims=True)

    # finalize scalar loss on the very last grid step
    @pl.when(jnp.logical_and(qi == nq - 1, ki == nk - 1))
    def _():
        c = col_acc[...]                                     # [nk_blocks, 1, blk]
        if masked:
            bid = jax.lax.broadcasted_iota(jnp.int32, c.shape, 0)
            lid = jax.lax.broadcasted_iota(jnp.int32, c.shape, 2)
            clogs = jnp.where(bid * blk + lid < n_valid, jnp.log(c), 0.0)
        else:
            clogs = jnp.log(c)
        logcol = jnp.sum(clogs)
        # loss = -mean(diag(sim)) + 0.5 * mean(log rowsum + log colsum)
        total = (-diag_acc[0, 0] + 0.5 * (logrow_acc[0, 0] + logcol)) \
                * jnp.float32(1.0 / n_valid)
        o_ref[0, 0] = total


# --------------------------------------------------------------------------------------
# Wrapper: padding / tiling / pallas_call plumbing
# --------------------------------------------------------------------------------------
@functools.partial(jax.jit, static_argnames=("tau", "block", "mxu_dtype"))
def _cnce_l2l_pallas(h1, h2, tau=0.2, block=256, mxu_dtype="bfloat16"):
    n, d = h1.shape
    assert h2.shape == (n, d), "h1/h2 must have identical [N, D] shapes"

    blk = _round_up(min(block, _round_up(n, 8)), 8)          # MXU-friendly square tile
    n_pad = _round_up(n, blk)
    d_pad = _round_up(d, 128)                                # lane-dense feature dim
    nq = n_pad // blk
    nk = n_pad // blk

    h1p = jnp.pad(h1.astype(jnp.float32), ((0, n_pad - n), (0, d_pad - d)))
    h2p = jnp.pad(h2.astype(jnp.float32), ((0, n_pad - n), (0, d_pad - d)))

    kernel = functools.partial(
        _cnce_l2l_kernel, tau=float(tau), n_valid=n, n_pad=n_pad, blk=blk,
        mxu_dtype=jnp.dtype(mxu_dtype))

    cost = pl.CostEstimate(
        flops=2 * n_pad * n_pad * d_pad + 8 * n_pad * n_pad,
        transcendentals=n_pad * n_pad + 4 * n_pad,
        bytes_accessed=2 * n_pad * d_pad * 4 + 4)

    out = pl.pallas_call(
        kernel,
        out_shape=jax.ShapeDtypeStruct((1, 1), jnp.float32),
        grid_spec=pltpu.PrefetchScalarGridSpec(
            num_scalar_prefetch=0,
            grid=(nq, nk),
            in_specs=[
                pl.BlockSpec((blk, d_pad), lambda qi, ki: (qi, 0)),   # z1 query tile
                pl.BlockSpec((blk, d_pad), lambda qi, ki: (ki, 0)),   # z2 key tile
            ],
            out_specs=pl.BlockSpec(memory_space=pltpu.SMEM),
            scratch_shapes=[
                pltpu.VMEM((blk, 1), jnp.float32),        # per-query-tile row sums of exp
                pltpu.VMEM((nk, 1, blk), jnp.float32),    # global column sums of exp
                pltpu.VMEM((1, 1), jnp.float32),          # sum of diag(sim)
                pltpu.VMEM((1, 1), jnp.float32),          # sum of log(row sums)
            ]),
        compiler_params=pltpu.CompilerParams(
            # column-sum scratch accumulates across the query axis -> keep it on one core
            dimension_semantics=("arbitrary", "arbitrary")),
        cost_estimate=cost,
    )(h1p, h2p)
    return out[0, 0]


# --------------------------------------------------------------------------------------
# Pure-JAX glue / reference (mirrors the PyTorch module)
# --------------------------------------------------------------------------------------
def add_extra_mask(pos_mask, neg_mask=None, extra_pos_mask=None, extra_neg_mask=None):
    if extra_pos_mask is not None:
        pos_mask = jnp.logical_or(pos_mask.astype(bool),
                                  extra_pos_mask.astype(bool)).astype(jnp.float32)
    if extra_neg_mask is not None:
        neg_mask = jnp.logical_and(neg_mask.astype(bool),
                                   extra_neg_mask.astype(bool)).astype(jnp.float32)
    else:
        neg_mask = 1.0 - pos_mask
    return pos_mask, neg_mask


def _l2_normalize(x, eps=1e-12):
    n = jnp.sqrt(jnp.sum(x * x, axis=-1, keepdims=True))
    return x / jnp.maximum(n, eps)


def _reference_loss(h1, h2, tau=0.2, extra_pos_mask=None, extra_neg_mask=None):
    n = h1.shape[0]
    pos = jnp.eye(n, dtype=jnp.float32)
    neg = 1.0 - pos
    pos, neg = add_extra_mask(pos, neg, extra_pos_mask, extra_neg_mask)
    z1 = _l2_normalize(h1.astype(jnp.float32))
    z2 = _l2_normalize(h2.astype(jnp.float32))

    def info_nce(anchor, sample):
        sim = jnp.dot(anchor, sample.T, precision=jax.lax.Precision.HIGHEST) / tau
        exp_sim = jnp.exp(sim) * (pos + neg)
        log_prob = sim - jnp.log(jnp.sum(exp_sim, axis=1, keepdims=True))
        loss = jnp.sum(log_prob * pos, axis=1) / jnp.sum(pos, axis=1)
        return -jnp.mean(loss)

    return (info_nce(z1, z2) + info_nce(z2, z1)) * 0.5


def cnce_contrast_l2l(h1, h2, tau=0.2, extra_pos_mask=None, extra_neg_mask=None,
                      block=256, mxu_dtype="bfloat16"):
    """Forward of cNCEContrast(mode='L2L', loss=InfoNCE(tau)). Returns the scalar loss."""
    if extra_pos_mask is not None or extra_neg_mask is not None:
        # TODO(synk): extra pos/neg masks use the pure-JAX path; the tiled Pallas kernel
        # covers the default L2L masks (pos=eye, neg=1-eye) only.
        return _reference_loss(h1, h2, tau=tau, extra_pos_mask=extra_pos_mask,
                               extra_neg_mask=extra_neg_mask)
    return _cnce_l2l_pallas(h1, h2, tau=float(tau), block=int(block),
                            mxu_dtype=str(mxu_dtype))


if __name__ == "__main__":
    key = jax.random.PRNGKey(0)
    TAU = 0.2

    # Case 1: small graph (single tile): N=8 nodes, hidden dim 32.
    k1, k2 = jax.random.split(key)
    N, D = 8, 32
    h1 = jax.random.normal(k1, (N, D), dtype=jnp.float32)
    h2 = jax.random.normal(k2, (N, D), dtype=jnp.float32)

    ref = _reference_loss(h1, h2, tau=TAU)

    loss_f32 = jax.block_until_ready(
        cnce_contrast_l2l(h1, h2, tau=TAU, mxu_dtype="float32"))
    assert jnp.allclose(loss_f32, ref, rtol=1e-2, atol=1e-2), (loss_f32, ref)

    loss_bf16 = jax.block_until_ready(cnce_contrast_l2l(h1, h2, tau=TAU))  # bf16 MXU path
    assert jnp.allclose(loss_bf16, ref, rtol=6e-2, atol=6e-2), (loss_bf16, ref)

    # Case 2: multi-tile grid with N not a multiple of the block (exercises the padding
    # masks, multi-step row/column accumulation, and the diagonal-tile logic).
    k3, k4 = jax.random.split(k2)
    N2, D2 = 200, 48
    g1 = jax.random.normal(k3, (N2, D2), dtype=jnp.float32)
    g2 = jax.random.normal(k4, (N2, D2), dtype=jnp.float32)

    ref2 = _reference_loss(g1, g2, tau=TAU)
    loss2 = jax.block_until_ready(
        cnce_contrast_l2l(g1, g2, tau=TAU, block=128, mxu_dtype="float32"))
    assert jnp.allclose(loss2, ref2, rtol=1e-2, atol=1e-2), (loss2, ref2)

    print("KERNEL_OK")
</pallas_src>

<mosaic_0001>
module attributes {stable_mosaic.version = 11 : i64} {
  func.func @_cnce_l2l_kernel(%arg0: i32, %arg1: i32, %arg2: memref<8x128xf32, #tpu.memory_space<vmem>>, %arg3: memref<8x128xf32, #tpu.memory_space<vmem>>, %arg4: memref<1x1xf32, #tpu.memory_space<smem>>, %arg5: memref<8x1xf32, #tpu.memory_space<vmem>>, %arg6: memref<1x1x8xf32, #tpu.memory_space<vmem>>, %arg7: memref<1x1xf32, #tpu.memory_space<vmem>>, %arg8: memref<1x1xf32, #tpu.memory_space<vmem>>) attributes {dimension_semantics = [#tpu.dimension_semantics<arbitrary>, #tpu.dimension_semantics<arbitrary>], iteration_bounds = array<i64: 1, 1>, scalar_prefetch = 0 : i64, scratch_operands = 4 : i64, tpu.core_type = #tpu.core_type<tc>, window_params = [{transform_indices = @transform_0, window_bounds = array<i64: 8, 128>}, {transform_indices = @transform_1, window_bounds = array<i64: 8, 128>}, {transform_indices = @transform_2, window_bounds = array<i64: 1, 1>}]} {
    %c0_i32 = arith.constant 0 : i32
    %0 = arith.cmpi eq, %arg0, %c0_i32 : i32
    %c0_i32_0 = arith.constant 0 : i32
    %1 = arith.cmpi eq, %arg1, %c0_i32_0 : i32
    %2 = arith.andi %0, %1 : i1
    %3 = arith.extui %2 : i1 to i32
    %c0_i32_1 = arith.constant 0 : i32
    %4 = arith.cmpi ne, %3, %c0_i32_1 : i32
    scf.if %4 {
      %cst_28 = arith.constant 0.000000e+00 : f32
      %56 = vector.broadcast %cst_28 : f32 to vector<1x1x8xf32>
      %c0_29 = arith.constant 0 : index
      %c0_30 = arith.constant 0 : index
      %c0_31 = arith.constant 0 : index
      %57 = vector.load %arg6[%c0_29, %c0_30, %c0_31] : memref<1x1x8xf32, #tpu.memory_space<vmem>>, vector<1x1x8xf32>
      tpu.vector_store %arg6[%c0_29, %c0_30, %c0_31], %56 {strides = array<i32>} : memref<1x1x8xf32, #tpu.memory_space<vmem>>, vector<1x1x8xf32>,
      %cst_32 = arith.constant 0.000000e+00 : f32
      %58 = vector.broadcast %cst_32 : f32 to vector<1x1xf32>
      %c0_33 = arith.constant 0 : index
      %c0_34 = arith.constant 0 : index
      %59 = vector.load %arg7[%c0_33, %c0_34] : memref<1x1xf32, #tpu.memory_space<vmem>>, vector<1x1xf32>
      tpu.vector_store %arg7[%c0_33, %c0_34], %58 {strides = array<i32>} : memref<1x1xf32, #tpu.memory_space<vmem>>, vector<1x1xf32>,
      %cst_35 = arith.constant 0.000000e+00 : f32
      %60 = vector.broadcast %cst_35 : f32 to vector<1x1xf32>
      %c0_36 = arith.constant 0 : index
      %c0_37 = arith.constant 0 : index
      %61 = vector.load %arg8[%c0_36, %c0_37] : memref<1x1xf32, #tpu.memory_space<vmem>>, vector<1x1xf32>
      tpu.vector_store %arg8[%c0_36, %c0_37], %60 {strides = array<i32>} : memref<1x1xf32, #tpu.memory_space<vmem>>, vector<1x1xf32>,
    } else {
    }
    %c0_i32_2 = arith.constant 0 : i32
    %5 = arith.cmpi eq, %arg1, %c0_i32_2 : i32
    %6 = arith.extui %5 : i1 to i32
    %c0_i32_3 = arith.constant 0 : i32
    %7 = arith.cmpi ne, %6, %c0_i32_3 : i32
    scf.if %7 {
      %cst_28 = arith.constant 0.000000e+00 : f32
      %56 = vector.broadcast %cst_28 : f32 to vector<8x1xf32>
      %c0_29 = arith.constant 0 : index
      %c0_30 = arith.constant 0 : index
      %57 = vector.load %arg5[%c0_29, %c0_30] : memref<8x1xf32, #tpu.memory_space<vmem>>, vector<8x1xf32>
      tpu.vector_store %arg5[%c0_29, %c0_30], %56 {strides = array<i32>} : memref<8x1xf32, #tpu.memory_space<vmem>>, vector<8x1xf32>,
    } else {
    }
    %c0 = arith.constant 0 : index
    %c0_4 = arith.constant 0 : index
    %8 = vector.load %arg2[%c0, %c0_4] : memref<8x128xf32, #tpu.memory_space<vmem>>, vector<8x128xf32>
    %c0_5 = arith.constant 0 : index
    %c0_6 = arith.constant 0 : index
    %9 = vector.load %arg3[%c0_5, %c0_6] : memref<8x128xf32, #tpu.memory_space<vmem>>, vector<8x128xf32>
    %10 = arith.mulf %8, %8 : vector<8x128xf32>
    %cst = arith.constant dense<0.000000e+00> : vector<8xf32>
    %11 = vector.multi_reduction <add>, %10, %cst [1] : vector<8x128xf32> to vector<8xf32>
    %12 = vector.shape_cast %11 : vector<8xf32> to vector<8x1xf32>
    %cst_7 = arith.constant 1.000000e-24 : f32
    %13 = vector.broadcast %cst_7 : f32 to vector<8x1xf32>
    %14 = arith.maximumf %12, %13 : vector<8x1xf32>
    %15 = math.rsqrt %14 : vector<8x1xf32>
    %16 = vector.broadcast %15 : vector<8x1xf32> to vector<8x128xf32>
    %17 = arith.mulf %8, %16 : vector<8x128xf32>
    %18 = arith.mulf %9, %9 : vector<8x128xf32>
    %cst_8 = arith.constant dense<0.000000e+00> : vector<8xf32>
    %19 = vector.multi_reduction <add>, %18, %cst_8 [1] : vector<8x128xf32> to vector<8xf32>
    %20 = vector.shape_cast %19 : vector<8xf32> to vector<8x1xf32>
    %cst_9 = arith.constant 1.000000e-24 : f32
    %21 = vector.broadcast %cst_9 : f32 to vector<8x1xf32>
    %22 = arith.maximumf %20, %21 : vector<8x1xf32>
    %23 = math.rsqrt %22 : vector<8x1xf32>
    %24 = vector.broadcast %23 : vector<8x1xf32> to vector<8x128xf32>
    %25 = arith.mulf %9, %24 : vector<8x128xf32>
    %cst_10 = arith.constant 5.000000e+00 : f32
    %26 = vector.broadcast %cst_10 : f32 to vector<8x128xf32>
    %27 = arith.mulf %17, %26 : vector<8x128xf32>
    %cst_11 = arith.constant dense<0.000000e+00> : vector<8x8xf32>
    %28 = tpu.matmul %27, %25, %cst_11 {dimension_numbers = #tpu.dot_dimension_numbers<[1], [1], [0], [0], [0, 0, 1, 0], [], []>} : vector<8x128xf32>, vector<8x128xf32>, vector<8x8xf32> -> vector<8x8xf32>
    %29 = math.exp %28 : vector<8x8xf32>
    %c0_12 = arith.constant 0 : index
    %c0_13 = arith.constant 0 : index
    %30 = vector.load %arg5[%c0_12, %c0_13] : memref<8x1xf32, #tpu.memory_space<vmem>>, vector<8x1xf32>
    %cst_14 = arith.constant dense<0.000000e+00> : vector<8xf32>
    %31 = vector.multi_reduction <add>, %29, %cst_14 [1] : vector<8x8xf32> to vector<8xf32>
    %32 = vector.shape_cast %31 : vector<8xf32> to vector<8x1xf32>
    %33 = arith.addf %30, %32 : vector<8x1xf32>
    %c0_15 = arith.constant 0 : index
    %c0_16 = arith.constant 0 : index
    %34 = vector.load %arg5[%c0_15, %c0_16] : memref<8x1xf32, #tpu.memory_space<vmem>>, vector<8x1xf32>
    tpu.vector_store %arg5[%c0_15, %c0_16], %33 {strides = array<i32>} : memref<8x1xf32, #tpu.memory_space<vmem>>, vector<8x1xf32>,
    %35 = arith.index_cast %arg1 : i32 to index
    %c0_17 = arith.constant 0 : index
    %c0_18 = arith.constant 0 : index
    %36 = vector.load %arg6[%35, %c0_17, %c0_18] : memref<1x1x8xf32, #tpu.memory_space<vmem>>, vector<1x1x8xf32>
    %37 = vector.shape_cast %36 : vector<1x1x8xf32> to vector<1x8xf32>
    %cst_19 = arith.constant dense<0.000000e+00> : vector<8xf32>
    %38 = vector.multi_reduction <add>, %29, %cst_19 [0] : vector<8x8xf32> to vector<8xf32>
    %39 = vector.shape_cast %38 : vector<8xf32> to vector<1x8xf32>
    %40 = arith.addf %37, %39 : vector<1x8xf32>
    %41 = arith.index_cast %arg1 : i32 to index
    %c0_20 = arith.constant 0 : index
    %c0_21 = arith.constant 0 : index
    %42 = vector.load %arg6[%41, %c0_20, %c0_21] : memref<1x1x8xf32, #tpu.memory_space<vmem>>, vector<1x1x8xf32>
    %43 = vector.shape_cast %42 : vector<1x1x8xf32> to vector<1x8xf32>
    %44 = vector.shape_cast %40 : vector<1x8xf32> to vector<1x1x8xf32>
    tpu.vector_store %arg6[%41, %c0_20, %c0_21], %44 {strides = array<i32>} : memref<1x1x8xf32, #tpu.memory_space<vmem>>, vector<1x1x8xf32>,
    %45 = arith.cmpi eq, %arg0, %arg1 : i32
    %46 = arith.extui %45 : i1 to i32
    %c0_i32_22 = arith.constant 0 : i32
    %47 = arith.cmpi ne, %46, %c0_i32_22 : i32
    scf.if %47 {
      %56 = tpu.iota {dimensions = array<i32: 0>} : vector<8x8xi32>
      %57 = tpu.iota {dimensions = array<i32: 1>} : vector<8x8xi32>
      %58 = arith.cmpi eq, %56, %57 : vector<8x8xi32>
      %c0_28 = arith.constant 0 : index
      %c0_29 = arith.constant 0 : index
      %59 = vector.load %arg7[%c0_28, %c0_29] : memref<1x1xf32, #tpu.memory_space<vmem>>, vector<1x1xf32>
      %cst_30 = arith.constant 0.000000e+00 : f32
      %60 = vector.broadcast %cst_30 : f32 to vector<8x8xf32>
      %61 = arith.select %58, %28, %60 : vector<8x8xi1>, vector<8x8xf32>
      %62 = vector.shape_cast %61 : vector<8x8xf32> to vector<1x8x8xf32>
      %cst_31 = arith.constant dense<0.000000e+00> : vector<1xf32>
      %63 = vector.multi_reduction <add>, %62, %cst_31 [1, 2] : vector<1x8x8xf32> to vector<1xf32>
      %64 = vector.shape_cast %63 : vector<1xf32> to vector<1x1x1xf32>
      %65 = vector.extract %64[0, 0, 0] : f32 from vector<1x1x1xf32>
      %66 = vector.broadcast %65 : f32 to vector<1x1xf32>
      %67 = arith.addf %59, %66 : vector<1x1xf32>
      %c0_32 = arith.constant 0 : index
      %c0_33 = arith.constant 0 : index
      %68 = vector.load %arg7[%c0_32, %c0_33] : memref<1x1xf32, #tpu.memory_space<vmem>>, vector<1x1xf32>
      tpu.vector_store %arg7[%c0_32, %c0_33], %67 {strides = array<i32>} : memref<1x1xf32, #tpu.memory_space<vmem>>, vector<1x1xf32>,
    } else {
    }
    %c0_i32_23 = arith.constant 0 : i32
    %48 = arith.cmpi eq, %arg1, %c0_i32_23 : i32
    %49 = arith.extui %48 : i1 to i32
    %c0_i32_24 = arith.constant 0 : i32
    %50 = arith.cmpi ne, %49, %c0_i32_24 : i32
    scf.if %50 {
      %c0_28 = arith.constant 0 : index
      %c0_29 = arith.constant 0 : index
      %56 = vector.load %arg5[%c0_28, %c0_29] : memref<8x1xf32, #tpu.memory_space<vmem>>, vector<8x1xf32>
      %57 = math.log %56 : vector<8x1xf32>
      %c0_30 = arith.constant 0 : index
      %c0_31 = arith.constant 0 : index
      %58 = vector.load %arg8[%c0_30, %c0_31] : memref<1x1xf32, #tpu.memory_space<vmem>>, vector<1x1xf32>
      %59 = vector.shape_cast %57 : vector<8x1xf32> to vector<1x8x1xf32>
      %cst_32 = arith.constant dense<0.000000e+00> : vector<1xf32>
      %60 = vector.multi_reduction <add>, %59, %cst_32 [1, 2] : vector<1x8x1xf32> to vector<1xf32>
      %61 = vector.shape_cast %60 : vector<1xf32> to vector<1x1x1xf32>
      %62 = vector.extract %61[0, 0, 0] : f32 from vector<1x1x1xf32>
      %63 = vector.broadcast %62 : f32 to vector<1x1xf32>
      %64 = arith.addf %58, %63 : vector<1x1xf32>
      %c0_33 = arith.constant 0 : index
      %c0_34 = arith.constant 0 : index
      %65 = vector.load %arg8[%c0_33, %c0_34] : memref<1x1xf32, #tpu.memory_space<vmem>>, vector<1x1xf32>
      tpu.vector_store %arg8[%c0_33, %c0_34], %64 {strides = array<i32>} : memref<1x1xf32, #tpu.memory_space<vmem>>, vector<1x1xf32>,
    } else {
    }
    %c0_i32_25 = arith.constant 0 : i32
    %51 = arith.cmpi eq, %arg0, %c0_i32_25 : i32
    %c0_i32_26 = arith.constant 0 : i32
    %52 = arith.cmpi eq, %arg1, %c0_i32_26 : i32
    %53 = arith.andi %51, %52 : i1
    %54 = arith.extui %53 : i1 to i32
    %c0_i32_27 = arith.constant 0 : i32
    %55 = arith.cmpi ne, %54, %c0_i32_27 : i32
    scf.if %55 {
      %c0_28 = arith.constant 0 : index
      %c0_29 = arith.constant 0 : index
      %c0_30 = arith.constant 0 : index
      %56 = vector.load %arg6[%c0_28, %c0_29, %c0_30] : memref<1x1x8xf32, #tpu.memory_space<vmem>>, vector<1x1x8xf32>
      %57 = math.log %56 : vector<1x1x8xf32>
      %58 = vector.shape_cast %57 : vector<1x1x8xf32> to vector<1x1x1x8xf32>
      %cst_31 = arith.constant dense<0.000000e+00> : vector<1xf32>
      %59 = vector.multi_reduction <add>, %58, %cst_31 [1, 2, 3] : vector<1x1x1x8xf32> to vector<1xf32>
      %60 = vector.shape_cast %59 : vector<1xf32> to vector<1x1x1x1xf32>
      %61 = vector.extract %60[0, 0, 0, 0] : f32 from vector<1x1x1x1xf32>
      %c0_32 = arith.constant 0 : index
      %c0_33 = arith.constant 0 : index
      %62 = vector.load %arg7[%c0_32, %c0_33] : memref<1x1xf32, #tpu.memory_space<vmem>>, vector<1x1xf32>
      %63 = vector.extract %62[0, 0] : f32 from vector<1x1xf32>
      %cst_34 = arith.constant 0.000000e+00 : f32
      %64 = arith.subf %cst_34, %63 : f32
      %c0_35 = arith.constant 0 : index
      %c0_36 = arith.constant 0 : index
      %65 = vector.load %arg8[%c0_35, %c0_36] : memref<1x1xf32, #tpu.memory_space<vmem>>, vector<1x1xf32>
      %66 = vector.extract %65[0, 0] : f32 from vector<1x1xf32>
      %67 = arith.addf %66, %61 : f32
      %cst_37 = arith.constant 5.000000e-01 : f32
      %68 = arith.mulf %cst_37, %67 : f32
      %69 = arith.addf %64, %68 : f32
      %cst_38 = arith.constant 1.250000e-01 : f32
      %70 = arith.mulf %69, %cst_38 : f32
      %c0_39 = arith.constant 0 : index
      %c0_40 = arith.constant 0 : index
      %71 = memref.load %arg4[%c0_39, %c0_40] : memref<1x1xf32, #tpu.memory_space<smem>>
      memref.store %70, %arg4[%c0_39, %c0_40] : memref<1x1xf32, #tpu.memory_space<smem>>
    } else {
    }
    return
  }
  func.func @transform_0(%arg0: i32, %arg1: i32) -> (i32, i32) {
    %c0_i32 = arith.constant 0 : i32
    %c0_i32_0 = arith.constant 0 : i32
    return %arg0, %c0_i32 : i32, i32
  }
  func.func @transform_1(%arg0: i32, %arg1: i32) -> (i32, i32) {
    %c0_i32 = arith.constant 0 : i32
    %c0_i32_0 = arith.constant 0 : i32
    return %arg1, %c0_i32 : i32, i32
  }
  func.func @transform_2(%arg0: i32, %arg1: i32) -> (i32, i32) {
    %c0_i32 = arith.constant 0 : i32
    %c0_i32_0 = arith.constant 0 : i32
    %c0_i32_1 = arith.constant 0 : i32
    return %c0_i32, %c0_i32_0 : i32, i32
  }
}

</mosaic_0001>

<bundles_post_ra>
// kernel: _cnce_l2l_pallas.1
= control target key start
LH: loop header
LB: loop body
LE: loop exit
PB: predicated region body
PF: predicated region fallthrough
CT: control target
= control target key end

     0   :  { %s260_s0 = inlined_call_operand.vmem [shape: f32[8,128], index: 0, kind: input, shape index: {}]   ;;  %s261_s1 = inlined_call_operand.vmem [shape: f32[8,128], index: 1, kind: input, shape index: {}]   ;;  %s262_s2 = inlined_call_operand.hbm [shape: f32[1,1], index: 2, kind: output, shape index: {}]  }
   0x1   :  { %v29_v0 = vld [vmem:[%s261_s1] sm:$0xff] }
   0x2   :  { %7 = vsyncpa [#allocation7], 0  ;;  %v45_v1 = vmul.f32 %v29_v0, %v29_v0  ;;  %v28_v2 = vld [vmem:[%s260_s0] sm:$0xff]  ;;  %vm18_vm6 = vcmask 57344   ;;  %v224_v25 = vmov 0.0   ;;  %v105_v28 = vlaneseq  ;;  %s178_s21 = sshll.u32 %s262_s2, 4  ;;  %s179_s21 = int_to_ptr.hbm [resolvable:$true] %s178_s21 }
   0x3   :  { %v30_v3 = vmul.f32 %v28_v2, %v28_v2  ;;  %19 = vst.msk [vmem:[#allocation3] sm:$0x1] %vm18_vm6, %v224_v25  ;;  %vm84_vm7 = vcmask 64512   ;;  %vm26_vm9 = vcmask 7168   ;;  %vm20_vm10 = vcmask 0   ;;  %s225_s24 = smov [#allocation6]  }
   0x4   :  { %46 = vadd.xlane.f32.xlu0 %v45_v1  ;;  %v106_v29 = vshrl.u32 %v105_v28, 7  ;;  %v108_v30 = vand.u32 127, %v105_v28  ;;  %27 = vst.msk [vmem:[#allocation2] sm:$0xff] %vm26_vm9, %v224_v25 }
   0x5   :  { %21 = vst.msk [vmem:[#allocation4] sm:$0x1] %vm20_vm10, %v224_v25 }
   0x6   :  { %vm109_vm8 = vcmp.eq.s32.totalorder %v106_v29, %v108_v30  ;;  %22 = vst.msk [vmem:[#allocation5] sm:$0x1] %vm20_vm10, %v224_v25 }
   0xa   :  { %v91_v40 = vld [vmem:[#allocation3] sm:$0x1] }
   0xb   :  { %v83_v43 = vld [vmem:[#allocation2] sm:$0xff] }
   0xc   :  { %31 = vadd.xlane.f32.xlu0 %v30_v3  ;;  %v110_v61 = vld [vmem:[#allocation4] sm:$0x1] }
  0x77   :  { %v47_v4 = vpop.xlane.xlu0 %46 }
  0x78   :  { %v48_v5 = vmax.f32 %v47_v4, 1e-24 }
  0x7a   :  { %200 = vrsqrt.f32 %v48_v5  ;;  %vm55_vm1 = vweird.f32 %v48_v5 }
  0x7f   :  { %v32_v6 = vpop.xlane.xlu0 %31 }
  0x80   :  { %v201_v7 = vpop.eup %200  ;;  %v33_v8 = vmax.f32 %v32_v6, 1e-24 }
  0x81   :  { %v50_v9 = vmul.f32 %v201_v7, %v48_v5  ;;  %vm56_vm0 = vweird.f32 %v201_v7 }
  0x82   :  { %202 = vrsqrt.f32 %v33_v8  ;;  %vm57_vm2 = vmor %vm55_vm1, %vm56_vm0  ;;  %vm40_vm4 = vweird.f32 %v33_v8 }
  0x83   :  { %v51_v10 = vmul.f32 %v201_v7, %v50_v9 }
  0x85   :  { %v52_v11 = vmul.f32 0.5, %v51_v10 }
  0x87   :  { %v53_v12 = vsub.f32 1.5, %v52_v11 }
  0x88   :  { %v203_v13 = vpop.eup %202 }
  0x89   :  { %v35_v14 = vmul.f32 %v203_v13, %v33_v8  ;;  %v54_v15 = vmul.f32 %v201_v7, %v53_v12  ;;  %vm41_vm3 = vweird.f32 %v203_v13 }
  0x8a   :  { %vm42_vm5 = vmor %vm40_vm4, %vm41_vm3 }
  0x8b   :  { %v36_v16 = vmul.f32 %v203_v13, %v35_v14  ;;  %v58_v17 = vsel %vm57_vm2, %v201_v7, %v54_v15  ;;  %v132_v15 = vld [vmem:[#allocation5] sm:$0x1] }
  0x8c   :  { %v59_v18 = vmul.f32 %v58_v17, %v29_v0 }
  0x8d   :  { %v37_v19 = vmul.f32 0.5, %v36_v16 }
  0x8e   :  { %76 = vmatpush.xpose.msra.mxu0 %v59_v18 }
  0x8f   :  { %v38_v20 = vsub.f32 1.5, %v37_v19 }
  0x91   :  { %v39_v21 = vmul.f32 %v203_v13, %v38_v20 }
  0x93   :  { %v43_v22 = vsel %vm42_vm5, %v203_v13, %v39_v21 }
  0x94   :  { %v44_v23 = vmul.f32 %v43_v22, %v28_v2 }
  0x96   :  { %v60_v24 = vmul.f32 5.0, %v44_v23 }
  0x98   :  { %77 = vmatmul.f32.vlgmr.msra.gmra.mxu0 %v60_v24 }
 0x115   :  { %v78_v26 = vpop.f32.mrf.mxu0 }
 0x116   :  { %v81_v27 = vmul.f32 1.442695, %v78_v26  ;;  %v111_v35 = vsel %vm109_vm8, %v78_v26, 0.0 }
 0x117   :  { %v112_v38 = vsel %vm84_vm7, %v111_v35, 0.0 }
 0x118   :  { %204 = vpow2.f32 %v81_v27 }
 0x11e   :  { %v205_v31 = vpop.eup %204 }
 0x11f   :  { %v85_v32 = vsel %vm84_vm7, %v205_v31, 0.0 }
 0x120   :  { %86 = vadd.xlane.f32.xlu1 %v85_v32  ;;  %v92_v33 = vrot.slane %v85_v32, 4 }
 0x122   :  { %v93_v34 = vadd.f32 %v92_v33, %v85_v32 }
 0x124   :  { %v94_v36 = vrot.slane %v93_v34, 2 }
 0x126   :  { %v95_v37 = vadd.f32 %v94_v36, %v93_v34 }
 0x128   :  { %v96_v39 = vrot.slane %v95_v37, 1  ;;  %113 = vadd.xlane.f32.xlu1 %v112_v38 }
 0x12a   :  { %v97_v41 = vadd.f32 %v96_v39, %v95_v37 }
 0x12c   :  { %v98_v42 = vadd.f32 %v97_v41, %v91_v40 }
 0x12e   :  { %100 = vst.msk [vmem:[#allocation3] sm:$0x1] %vm18_vm6, %v98_v42 }
 0x135   :  { %v149_v50 = vld [vmem:[#allocation3] sm:$0x1] }
 0x193   :  { %v87_v44 = vpop.xlane.xlu1 %86 }
 0x194   :  { %v88_v45 = vadd.f32 %v87_v44, %v83_v43 }
 0x196   :  { %90 = vst.msk [vmem:[#allocation2] sm:$0xff] %vm26_vm9, %v88_v45 }
 0x19b   :  { %v114_v46 = vpop.xlane.xlu1 %113 }
 0x19c   :  { %v115_v47 = vrot.slane %v114_v46, 4 }
 0x19d   :  { %v129_v48 = vld [vmem:[#allocation2] sm:$0xff] }
 0x19e   :  { %v116_v49 = vadd.f32 %v115_v47, %v114_v46  ;;  %206 = vlog2.f32 %v129_v48 }
 0x19f   :  { %208 = vlog2.f32 %v149_v50 }
 0x1a0   :  { %v117_v51 = vrot.slane %v116_v49, 2 }
 0x1a2   :  { %v118_v52 = vadd.f32 %v117_v51, %v116_v49 }
 0x1a4   :  { %v207_v53 = vpop.eup %206  ;;  %v119_v54 = vrot.slane %v118_v52, 1 }
 0x1a5   :  { %v131_v55 = vmul.f32 0.6931472, %v207_v53  ;;  %v209_v58 = vpop.eup %208 }
 0x1a6   :  { %v120_v56 = vadd.f32 %v119_v54, %v118_v52  ;;  %v151_v59 = vmul.f32 0.6931472, %v209_v58 }
 0x1a7   :  { %v133_v57 = vsel %vm26_vm9, %v131_v55, 0.0 }
 0x1a8   :  { %188 = vpush %v120_v56  ;;  %134 = vadd.xlane.f32.xlu2 %v133_v57  ;;  %v152_v60 = vsel %vm18_vm6, %v151_v59, 0.0 }
 0x1b0   :  { %153 = vadd.xlane.f32.xlu2 %v152_v60 }
 0x1d9   :  { %s189_s0 = spop %188 }
 0x1da   :  { %v122_v62 = vstv %s189_s0 }
 0x1db   :  { %v123_v63 = vadd.f32 %v122_v62, %v110_v61 }
 0x1dd   :  { %125 = vst.msk [vmem:[#allocation4] sm:$0x1] %vm20_vm10, %v123_v63 }
 0x1e4   :  { %v162_v14 = vld [vmem:[#allocation4] sm:$0x1] }
 0x21b   :  { %v135_v0 = vpop.xlane.xlu2 %134 }
 0x21c   :  { %v136_v1 = vrot.slane %v135_v0, 4 }
 0x21e   :  { %v137_v2 = vadd.f32 %v136_v1, %v135_v0 }
 0x220   :  { %v138_v3 = vrot.slane %v137_v2, 2 }
 0x222   :  { %v139_v4 = vadd.f32 %v138_v3, %v137_v2 }
 0x223   :  { %v154_v5 = vpop.xlane.xlu2 %153 }
 0x224   :  { %v155_v6 = vrot.slane %v154_v5, 4  ;;  %v140_v7 = vrot.slane %v139_v4, 1 }
 0x226   :  { %v156_v8 = vadd.f32 %v155_v6, %v154_v5  ;;  %v141_v9 = vadd.f32 %v140_v7, %v139_v4 }
 0x228   :  { %v157_v10 = vrot.slane %v156_v8, 2  ;;  %190 = vpush %v141_v9 }
 0x22a   :  { %v158_v11 = vadd.f32 %v157_v10, %v156_v8 }
 0x22c   :  { %v159_v12 = vrot.slane %v158_v11, 1 }
 0x22e   :  { %v160_v13 = vadd.f32 %v159_v12, %v158_v11 }
 0x230   :  { %192 = vpush %v160_v13 }
 0x231   :  { %194 = vpush %v162_v14 }
 0x259   :  { %s191_s1 = spop %190 }
 0x25a   :  { %v143_v16 = vstv %s191_s1 }
 0x25b   :  { %v144_v17 = vadd.f32 %v143_v16, %v132_v15 }
 0x25d   :  { %146 = vst.msk [vmem:[#allocation5] sm:$0x1] %vm20_vm10, %v144_v17 }
 0x261   :  { %s193_s13 = spop %192 }
 0x262   :  { %s195_s14 = spop %194 }
 0x263   :  { %s164_s17 = ssub.f32 0.0, %s195_s14 }
 0x264   :  { %v165_v18 = vld [vmem:[#allocation5] sm:$0x1] }
 0x265   :  { %196 = vpush %v165_v18 }
 0x296   :  { %s197_s15 = spop %196 }
 0x297   :  { %s167_s16 = sadd.f32 %s197_s15, %s193_s13 }
 0x299   :  { %s168_s18 = smul.f32 0.5, %s167_s16 }
 0x29b   :  { %s169_s22 = sadd.f32 %s168_s18, %s164_s17 }
 0x29d   :  { %s170_s23 = smul.f32 0.125, %s169_s22 }
 0x29f   :  { %172 = sst [smem:[#allocation6]] %s170_s23 }
 0x2a0   :  { %181 = dma.smem_to_hbm %s225_s24, 16, %s179_s21, [#allocation7]  }
 0x2a1   :  { %222 = dma.done.wait [#allocation7], 16  }
 0x2a2   :  { %223 = vsyncadd [#allocation7], 4294967280 }
 0x2a3   :  { %186 = sfence }
 0x2a4   :  { %187 = vsyncpa [#allocation7], 1 }

</bundles_post_ra>
